<compile_context>
chip_gen: v5e
topology: v5e:2x2
jax: 0.10.0
libtpu: 0.0.40
codegen_flags: <defaults>
</compile_context>

<pallas_src>
import functools
import inspect
import math

import jax
import jax.numpy as jnp
from jax import lax
from jax.experimental import pallas as pl
from jax.experimental.pallas import tpu as pltpu


# Single-buffer support detection (grid-invariant weight blocks).
try:
    _HAS_PIPELINE_MODE = (
        hasattr(pl, "Buffered")
        and "pipeline_mode" in inspect.signature(pl.BlockSpec).parameters)
except (ValueError, TypeError):  # pragma: no cover
    _HAS_PIPELINE_MODE = False


def _resident(block_shape, index_map):
    """BlockSpec for a grid-invariant block: constant index map -> fetched once
    and kept resident; single-buffered when supported (no dead second buffer)."""
    if _HAS_PIPELINE_MODE:
        return pl.BlockSpec(block_shape, index_map, pipeline_mode=pl.Buffered(1))
    return pl.BlockSpec(block_shape, index_map)


def _softmax_exp_dtype():
    """bf16 exp on chips with a bf16-capable EUP (v6e/v7x); f32 on v5e/older."""
    try:
        kind = jax.devices()[0].device_kind.lower()
    except Exception:  # pragma: no cover
        return jnp.float32
    if any(t in kind for t in ("v2", "v3", "v4", "v5")):
        return jnp.float32
    return jnp.bfloat16


# ----------------------------------------------------------------------------
# Kernel A: fused QKV projection + LayerNorm(q, k) + head-major split.
#   q, v : (B, n_head, T, hd) bf16      (q pre-scaled by 1/sqrt(hd))
#   kT   : (B, n_head, hd, T) bf16      (stored transposed, lane-dense along T)
# ----------------------------------------------------------------------------
def _qkv_ln_kernel(x_ref, wqkv_ref, bqkv_ref, lnq_ref, lnk_ref,
                   q_ref, kt_ref, v_ref, *, n_head, head_dim, norm_eps):
    H = n_head * head_dim
    x = x_ref[0]                                               # (Tr, C) bf16
    # bf16 MXU operands, f32 accumulation.
    qkv = jnp.dot(x, wqkv_ref[...],
                  preferred_element_type=jnp.float32) + bqkv_ref[0]
    q = qkv[:, :H]
    k = qkv[:, H:2 * H]
    v = qkv[:, 2 * H:]

    def layernorm(z, w):                       # f32 statistics, no bias
        mu = jnp.mean(z, axis=-1, keepdims=True)
        var = jnp.mean((z - mu) * (z - mu), axis=-1, keepdims=True)
        return (z - mu) * lax.rsqrt(var + norm_eps) * w

    scale = 1.0 / math.sqrt(head_dim)
    q = layernorm(q, lnq_ref[0]) * scale       # fold attention scale into q
    k = layernorm(k, lnk_ref[0])

    # One f32 transpose per row tile; amortizes the K^T needed by the score
    # matmul (instead of an implicit RHS transpose per inner attention step).
    kt = k.T                                                   # (H, Tr) f32

    for h in range(n_head):
        lo = h * head_dim
        hi = lo + head_dim
        q_ref[0, h] = q[:, lo:hi].astype(q_ref.dtype)
        # Sublane slice of kt -> lane-dense (hd, Tr) store along T.
        kt_ref[0, h] = kt[lo:hi, :].astype(kt_ref.dtype)
        v_ref[0, h] = v[:, lo:hi].astype(v_ref.dtype)


# ----------------------------------------------------------------------------
# Kernel B: flash attention (online softmax) + fused output projection.
# Grid: (B, T//Tq, n_head, T//Tk); head & KV axes are sequential reductions.
# ----------------------------------------------------------------------------
def _flash_attn_proj_kernel(q_ref, kt_ref, v_ref, wproj_ref, bproj_ref, o_ref,
                            m_sc, l_sc, acc_sc, y_sc,
                            *, n_head, head_dim, exp_dtype):
    h = pl.program_id(2)
    ki = pl.program_id(3)
    nk = pl.num_programs(3)

    @pl.when(ki == 0)
    def _init_head():
        m_sc[...] = jnp.full_like(m_sc, -jnp.inf)
        l_sc[...] = jnp.zeros_like(l_sc)
        acc_sc[...] = jnp.zeros_like(acc_sc)

    q = q_ref[0, 0]                            # (Tq, hd) bf16, pre-scaled
    kt = kt_ref[0, 0]                          # (hd, Tk) bf16 (pre-transposed)
    v = v_ref[0, 0]                            # (Tk, hd) bf16

    # Plain (Tq,hd)@(hd,Tk) — no per-step RHS transpose.
    s = jnp.dot(q, kt, preferred_element_type=jnp.float32)     # (Tq, Tk) f32

    m_prev = m_sc[...]
    m_new = jnp.maximum(m_prev, jnp.max(s, axis=-1, keepdims=True))
    alpha = jnp.exp(m_prev - m_new)                             # (Tq, 1) f32
    # Bulk exponent: bf16 on v6e/v7x (bf16 EUP), f32 on v5e. Row-sum and the
    # p@v accumulation stay f32.
    p = jnp.exp((s - m_new).astype(exp_dtype))
    l_sc[...] = alpha * l_sc[...] + jnp.sum(p, axis=-1, keepdims=True,
                                            dtype=jnp.float32)
    acc_sc[...] = alpha * acc_sc[...] + jnp.dot(
        p.astype(jnp.bfloat16), v, preferred_element_type=jnp.float32)
    m_sc[...] = m_new

    @pl.when(ki == nk - 1)
    def _finish_head():
        # y_h = softmax(q k^T) @ v for this head -> its static lane slice of
        # the (Tq, H) y scratch (approx reciprocal: EUP slot, ~1e-3 rel err).
        y_h = (acc_sc[...] * pl.reciprocal(l_sc[...], approx=True)
               ).astype(y_sc.dtype)
        for hh in range(n_head):
            @pl.when(h == hh)
            def _store(y_h=y_h, hh=hh):
                y_sc[:, hh * head_dim:(hh + 1) * head_dim] = y_h

    @pl.when(jnp.logical_and(ki == nk - 1, h == n_head - 1))
    def _finish_out():
        # One K=H projection GEMM per (batch, q-tile): full MXU depth and a
        # single pass over the (Tq, C) output.
        o_ref[0] = (jnp.dot(y_sc[...], wproj_ref[...],
                            preferred_element_type=jnp.float32)
                    + bproj_ref[0]).astype(o_ref.dtype)


def _pick_tile(n, target):
    """Largest multiple-of-8 divisor of n that is <= target (else n itself,
    failing loudly if that would force a huge resident tile)."""
    if n <= target:
        return n
    for t in range(target, 7, -1):
        if n % t == 0 and t % 8 == 0:
            return t
    if n > 4 * target:
        raise ValueError(
            f"No multiple-of-8 tile <= {target} divides sequence length {n}; "
            f"pad the sequence to a multiple of 8/128.")
    return n


def self_attention_pallas(x, params, *, n_head, norm_eps=1e-6,
                          row_tile=256, q_tile=512, kv_tile=256):
    """x: (B, T, C) float32. params: dict of pre-transposed weights / biases."""
    B, T, C = x.shape
    H = params["ln_q_w"].shape[-1]
    assert H % n_head == 0
    hd = H // n_head

    # Pre-cast MXU operands to bf16 in the wrapper (halves their HBM->VMEM
    # DMA); biases and LayerNorm weights stay f32.
    x_bf16 = x.astype(jnp.bfloat16)
    w_qkv = params["w_qkv"].astype(jnp.bfloat16)                    # (C, 3H)
    b_qkv = params["b_qkv"].astype(jnp.float32)                     # (1, 3H)
    ln_q_w = params["ln_q_w"].astype(jnp.float32)                   # (1, H)
    ln_k_w = params["ln_k_w"].astype(jnp.float32)                   # (1, H)
    w_proj = params["w_proj"].astype(jnp.bfloat16)                  # (H, C)
    b_proj = params["b_proj"].astype(jnp.float32)                   # (1, C)

    Tr = _pick_tile(T, row_tile)
    Tq = _pick_tile(T, q_tile)
    Tk = _pick_tile(T, kv_tile)

    exp_dtype = _softmax_exp_dtype()
    vmem_limit = 48 * 1024 * 1024   # leave headroom under v7x's 64 MiB VMEM

    # ---------------- Kernel A: QKV + LayerNorm, head-major bf16 ------------
    head_shape = jax.ShapeDtypeStruct((B, n_head, T, hd), jnp.bfloat16)
    kt_shape = jax.ShapeDtypeStruct((B, n_head, hd, T), jnp.bfloat16)
    q_hm, kt_hm, v_hm = pl.pallas_call(
        functools.partial(_qkv_ln_kernel, n_head=n_head, head_dim=hd,
                          norm_eps=norm_eps),
        out_shape=(head_shape, kt_shape, head_shape),
        grid_spec=pltpu.PrefetchScalarGridSpec(
            num_scalar_prefetch=0,
            grid=(B, T // Tr),
            in_specs=[
                pl.BlockSpec((1, Tr, C), lambda b, r: (b, r, 0)),      # x (bf16)
                _resident((C, 3 * H), lambda b, r: (0, 0)),            # w_qkv
                _resident((1, 3 * H), lambda b, r: (0, 0)),            # b_qkv
                _resident((1, H), lambda b, r: (0, 0)),                # ln_q_w
                _resident((1, H), lambda b, r: (0, 0)),                # ln_k_w
            ],
            out_specs=[
                pl.BlockSpec((1, n_head, Tr, hd), lambda b, r: (b, 0, r, 0)),
                pl.BlockSpec((1, n_head, hd, Tr), lambda b, r: (b, 0, 0, r)),
                pl.BlockSpec((1, n_head, Tr, hd), lambda b, r: (b, 0, r, 0)),
            ],
        ),
        compiler_params=pltpu.CompilerParams(
            dimension_semantics=("parallel", "parallel"),
            vmem_limit_bytes=vmem_limit),
    )(x_bf16, w_qkv, b_qkv, ln_q_w, ln_k_w)

    # ------------- Kernel B: flash attention + output projection ------------
    out = pl.pallas_call(
        functools.partial(_flash_attn_proj_kernel, n_head=n_head, head_dim=hd,
                          exp_dtype=exp_dtype),
        out_shape=jax.ShapeDtypeStruct((B, T, C), x.dtype),
        grid_spec=pltpu.PrefetchScalarGridSpec(
            num_scalar_prefetch=0,
            grid=(B, T // Tq, n_head, T // Tk),
            in_specs=[
                pl.BlockSpec((1, 1, Tq, hd), lambda b, qi, h, ki: (b, h, qi, 0)),
                pl.BlockSpec((1, 1, hd, Tk), lambda b, qi, h, ki: (b, h, 0, ki)),
                pl.BlockSpec((1, 1, Tk, hd), lambda b, qi, h, ki: (b, h, ki, 0)),
                _resident((H, C), lambda b, qi, h, ki: (0, 0)),        # w_proj
                _resident((1, C), lambda b, qi, h, ki: (0, 0)),        # b_proj
            ],
            out_specs=pl.BlockSpec((1, Tq, C), lambda b, qi, h, ki: (b, qi, 0)),
            scratch_shapes=[
                pltpu.VMEM((Tq, 1), jnp.float32),     # m (running max)
                pltpu.VMEM((Tq, 1), jnp.float32),     # l (running sum)
                pltpu.VMEM((Tq, hd), jnp.float32),    # per-head accumulator
                pltpu.VMEM((Tq, H), jnp.bfloat16),    # per-q-tile y (all heads)
            ],
        ),
        compiler_params=pltpu.CompilerParams(
            dimension_semantics=("parallel", "parallel", "arbitrary", "arbitrary"),
            vmem_limit_bytes=vmem_limit),
    )(q_hm, kt_hm, v_hm, w_proj, b_proj)
    return out


def self_attention_ref(x, params, *, n_head, norm_eps=1e-6):
    """Pure-JAX f32 reference matching the PyTorch forward."""
    B, T, C = x.shape
    H = params["ln_q_w"].shape[-1]
    qkv = x @ params["w_qkv"] + params["b_qkv"][0]
    q, k, v = qkv[..., :H], qkv[..., H:2 * H], qkv[..., 2 * H:]

    def ln(z, w):
        mu = jnp.mean(z, axis=-1, keepdims=True)
        var = jnp.mean((z - mu) ** 2, axis=-1, keepdims=True)
        return (z - mu) / jnp.sqrt(var + norm_eps) * w

    q = ln(q, params["ln_q_w"][0])
    k = ln(k, params["ln_k_w"][0])
    hd = H // n_head
    q = q.reshape(B, T, n_head, hd).transpose(0, 2, 1, 3)
    k = k.reshape(B, T, n_head, hd).transpose(0, 2, 1, 3)
    v = v.reshape(B, T, n_head, hd).transpose(0, 2, 1, 3)
    s = jnp.einsum("bhtd,bhsd->bhts", q, k) / math.sqrt(hd)
    p = jax.nn.softmax(s, axis=-1)
    y = jnp.einsum("bhts,bhsd->bhtd", p, v)
    y = y.transpose(0, 2, 1, 3).reshape(B, T, H)
    return y @ params["w_proj"] + params["b_proj"][0]


if __name__ == "__main__":
    # Small shapes consistent with the module.
    B, T, C = 2, 8, 32
    n_head = 4
    n_hidden = C            # n_hidden defaults to n_embd

    key = jax.random.PRNGKey(0)
    kx, k1, k2, k3, k4 = jax.random.split(key, 5)

    x = jax.random.normal(kx, (B, T, C), dtype=jnp.float32)

    # Deterministic synthetic parameters (torch Linear weight is (out, in);
    # here stored pre-transposed as (in, out)).
    params = {
        "w_qkv": 0.02 * jax.random.normal(k1, (C, 3 * n_hidden), dtype=jnp.float32),
        "b_qkv": 0.01 * jax.random.normal(k2, (1, 3 * n_hidden), dtype=jnp.float32),
        "ln_q_w": jnp.ones((1, n_hidden), dtype=jnp.float32),
        "ln_k_w": jnp.ones((1, n_hidden), dtype=jnp.float32),
        "w_proj": 0.02 * jax.random.normal(k3, (n_hidden, C), dtype=jnp.float32),
        "b_proj": 0.01 * jax.random.normal(k4, (1, C), dtype=jnp.float32),
    }

    out = self_attention_pallas(x, params, n_head=n_head)
    out = jax.block_until_ready(out)

    ref = self_attention_ref(x, params, n_head=n_head)
    assert out.shape == (B, T, C)
    # bf16 MXU operands + bf16 softmax exponent (f32 accumulation / LayerNorm
    # statistics) + approx reciprocal => compare against the f32 reference at a
    # bf16-appropriate tolerance.
    assert jnp.allclose(out, ref, atol=1e-2, rtol=5e-2), "mismatch vs reference"

    print("KERNEL_OK")
</pallas_src>

<mosaic_0001>
module attributes {stable_mosaic.version = 11 : i64} {
  func.func @_qkv_ln_kernel(%arg0: i32, %arg1: i32, %arg2: memref<1x8x32xbf16, #tpu.memory_space<vmem>>, %arg3: memref<32x96xbf16, #tpu.memory_space<vmem>>, %arg4: memref<1x96xf32, #tpu.memory_space<vmem>>, %arg5: memref<1x32xf32, #tpu.memory_space<vmem>>, %arg6: memref<1x32xf32, #tpu.memory_space<vmem>>, %arg7: memref<1x4x8x8xbf16, #tpu.memory_space<vmem>>, %arg8: memref<1x4x8x8xbf16, #tpu.memory_space<vmem>>, %arg9: memref<1x4x8x8xbf16, #tpu.memory_space<vmem>>) attributes {dimension_semantics = [#tpu.dimension_semantics<parallel>, #tpu.dimension_semantics<parallel>], iteration_bounds = array<i64: 2, 1>, scalar_prefetch = 0 : i64, scratch_operands = 0 : i64, tpu.core_type = #tpu.core_type<tc>, window_params = [{transform_indices = @transform_0, window_bounds = array<i64: 1, 8, 32>}, {pipeline_mode = #tpu.pipeline_mode<synchronous>, transform_indices = @transform_1, window_bounds = array<i64: 32, 96>}, {pipeline_mode = #tpu.pipeline_mode<synchronous>, transform_indices = @transform_2, window_bounds = array<i64: 1, 96>}, {pipeline_mode = #tpu.pipeline_mode<synchronous>, transform_indices = @transform_3, window_bounds = array<i64: 1, 32>}, {pipeline_mode = #tpu.pipeline_mode<synchronous>, transform_indices = @transform_4, window_bounds = array<i64: 1, 32>}, {transform_indices = @transform_5, window_bounds = array<i64: 1, 4, 8, 8>}, {transform_indices = @transform_6, window_bounds = array<i64: 1, 4, 8, 8>}, {transform_indices = @transform_7, window_bounds = array<i64: 1, 4, 8, 8>}]} {
    %c0 = arith.constant 0 : index
    %c0_0 = arith.constant 0 : index
    %c0_1 = arith.constant 0 : index
    %0 = vector.load %arg2[%c0, %c0_0, %c0_1] : memref<1x8x32xbf16, #tpu.memory_space<vmem>>, vector<1x8x32xbf16>
    %1 = vector.shape_cast %0 : vector<1x8x32xbf16> to vector<8x32xbf16>
    %c0_2 = arith.constant 0 : index
    %c0_3 = arith.constant 0 : index
    %2 = vector.load %arg3[%c0_2, %c0_3] : memref<32x96xbf16, #tpu.memory_space<vmem>>, vector<32x96xbf16>
    %cst = arith.constant dense<0.000000e+00> : vector<8x96xf32>
    %3 = tpu.matmul %1, %2, %cst {dimension_numbers = #tpu.dot_dimension_numbers<[1], [0], [0], [1], [0, 0, 1, 1], [], []>} : vector<8x32xbf16>, vector<32x96xbf16>, vector<8x96xf32> -> vector<8x96xf32>
    %c0_4 = arith.constant 0 : index
    %c0_5 = arith.constant 0 : index
    %4 = vector.load %arg4[%c0_4, %c0_5] : memref<1x96xf32, #tpu.memory_space<vmem>>, vector<1x96xf32>
    %5 = vector.shape_cast %4 : vector<1x96xf32> to vector<96xf32>
    %6 = vector.shape_cast %5 : vector<96xf32> to vector<1x96xf32>
    %7 = vector.broadcast %6 : vector<1x96xf32> to vector<8x96xf32>
    %8 = arith.addf %3, %7 : vector<8x96xf32>
    %9 = vector.extract_strided_slice %8 {offsets = [0, 0], sizes = [8, 32], strides = [1, 1]} : vector<8x96xf32> to vector<8x32xf32>
    %10 = vector.extract_strided_slice %8 {offsets = [0, 32], sizes = [8, 32], strides = [1, 1]} : vector<8x96xf32> to vector<8x32xf32>
    %11 = vector.extract_strided_slice %8 {offsets = [0, 64], sizes = [8, 32], strides = [1, 1]} : vector<8x96xf32> to vector<8x32xf32>
    %c0_6 = arith.constant 0 : index
    %c0_7 = arith.constant 0 : index
    %12 = vector.load %arg5[%c0_6, %c0_7] : memref<1x32xf32, #tpu.memory_space<vmem>>, vector<1x32xf32>
    %13 = vector.shape_cast %12 : vector<1x32xf32> to vector<32xf32>
    %cst_8 = arith.constant dense<0.000000e+00> : vector<8xf32>
    %14 = vector.multi_reduction <add>, %9, %cst_8 [1] : vector<8x32xf32> to vector<8xf32>
    %15 = vector.shape_cast %14 : vector<8xf32> to vector<8x1xf32>
    %cst_9 = arith.constant 3.200000e+01 : f32
    %16 = vector.broadcast %cst_9 : f32 to vector<8x1xf32>
    %17 = arith.divf %15, %16 : vector<8x1xf32>
    %18 = vector.broadcast %17 : vector<8x1xf32> to vector<8x32xf32>
    %19 = arith.subf %9, %18 : vector<8x32xf32>
    %20 = vector.broadcast %17 : vector<8x1xf32> to vector<8x32xf32>
    %21 = arith.subf %9, %20 : vector<8x32xf32>
    %22 = arith.mulf %19, %21 : vector<8x32xf32>
    %cst_10 = arith.constant dense<0.000000e+00> : vector<8xf32>
    %23 = vector.multi_reduction <add>, %22, %cst_10 [1] : vector<8x32xf32> to vector<8xf32>
    %24 = vector.shape_cast %23 : vector<8xf32> to vector<8x1xf32>
    %cst_11 = arith.constant 3.200000e+01 : f32
    %25 = vector.broadcast %cst_11 : f32 to vector<8x1xf32>
    %26 = arith.divf %24, %25 : vector<8x1xf32>
    %27 = vector.broadcast %17 : vector<8x1xf32> to vector<8x32xf32>
    %28 = arith.subf %9, %27 : vector<8x32xf32>
    %cst_12 = arith.constant 9.99999997E-7 : f32
    %29 = vector.broadcast %cst_12 : f32 to vector<8x1xf32>
    %30 = arith.addf %26, %29 : vector<8x1xf32>
    %31 = math.rsqrt %30 : vector<8x1xf32>
    %32 = vector.broadcast %31 : vector<8x1xf32> to vector<8x32xf32>
    %33 = arith.mulf %28, %32 : vector<8x32xf32>
    %34 = vector.shape_cast %13 : vector<32xf32> to vector<1x32xf32>
    %35 = vector.broadcast %34 : vector<1x32xf32> to vector<8x32xf32>
    %36 = arith.mulf %33, %35 : vector<8x32xf32>
    %cst_13 = arith.constant 0.353553385 : f32
    %37 = vector.broadcast %cst_13 : f32 to vector<8x32xf32>
    %38 = arith.mulf %36, %37 : vector<8x32xf32>
    %c0_14 = arith.constant 0 : index
    %c0_15 = arith.constant 0 : index
    %39 = vector.load %arg6[%c0_14, %c0_15] : memref<1x32xf32, #tpu.memory_space<vmem>>, vector<1x32xf32>
    %40 = vector.shape_cast %39 : vector<1x32xf32> to vector<32xf32>
    %cst_16 = arith.constant dense<0.000000e+00> : vector<8xf32>
    %41 = vector.multi_reduction <add>, %10, %cst_16 [1] : vector<8x32xf32> to vector<8xf32>
    %42 = vector.shape_cast %41 : vector<8xf32> to vector<8x1xf32>
    %cst_17 = arith.constant 3.200000e+01 : f32
    %43 = vector.broadcast %cst_17 : f32 to vector<8x1xf32>
    %44 = arith.divf %42, %43 : vector<8x1xf32>
    %45 = vector.broadcast %44 : vector<8x1xf32> to vector<8x32xf32>
    %46 = arith.subf %10, %45 : vector<8x32xf32>
    %47 = vector.broadcast %44 : vector<8x1xf32> to vector<8x32xf32>
    %48 = arith.subf %10, %47 : vector<8x32xf32>
    %49 = arith.mulf %46, %48 : vector<8x32xf32>
    %cst_18 = arith.constant dense<0.000000e+00> : vector<8xf32>
    %50 = vector.multi_reduction <add>, %49, %cst_18 [1] : vector<8x32xf32> to vector<8xf32>
    %51 = vector.shape_cast %50 : vector<8xf32> to vector<8x1xf32>
    %cst_19 = arith.constant 3.200000e+01 : f32
    %52 = vector.broadcast %cst_19 : f32 to vector<8x1xf32>
    %53 = arith.divf %51, %52 : vector<8x1xf32>
    %54 = vector.broadcast %44 : vector<8x1xf32> to vector<8x32xf32>
    %55 = arith.subf %10, %54 : vector<8x32xf32>
    %cst_20 = arith.constant 9.99999997E-7 : f32
    %56 = vector.broadcast %cst_20 : f32 to vector<8x1xf32>
    %57 = arith.addf %53, %56 : vector<8x1xf32>
    %58 = math.rsqrt %57 : vector<8x1xf32>
    %59 = vector.broadcast %58 : vector<8x1xf32> to vector<8x32xf32>
    %60 = arith.mulf %55, %59 : vector<8x32xf32>
    %61 = vector.shape_cast %40 : vector<32xf32> to vector<1x32xf32>
    %62 = vector.broadcast %61 : vector<1x32xf32> to vector<8x32xf32>
    %63 = arith.mulf %60, %62 : vector<8x32xf32>
    %64 = tpu.transpose %63, [1, 0] : vector<8x32xf32> -> vector<32x8xf32>
    %65 = vector.extract_strided_slice %38 {offsets = [0, 0], sizes = [8, 8], strides = [1, 1]} : vector<8x32xf32> to vector<8x8xf32>
    %66 = arith.truncf %65 : vector<8x8xf32> to vector<8x8xbf16>
    %c0_21 = arith.constant 0 : index
    %c0_22 = arith.constant 0 : index
    %c0_23 = arith.constant 0 : index
    %c0_24 = arith.constant 0 : index
    %67 = vector.load %arg7[%c0_21, %c0_22, %c0_23, %c0_24] : memref<1x4x8x8xbf16, #tpu.memory_space<vmem>>, vector<1x1x8x8xbf16>
    %68 = vector.shape_cast %67 : vector<1x1x8x8xbf16> to vector<8x8xbf16>
    %69 = vector.shape_cast %66 : vector<8x8xbf16> to vector<1x1x8x8xbf16>
    tpu.vector_store %arg7[%c0_21, %c0_22, %c0_23, %c0_24], %69 {strides = array<i32>} : memref<1x4x8x8xbf16, #tpu.memory_space<vmem>>, vector<1x1x8x8xbf16>,
    %70 = vector.extract_strided_slice %64 {offsets = [0, 0], sizes = [8, 8], strides = [1, 1]} : vector<32x8xf32> to vector<8x8xf32>
    %71 = arith.truncf %70 : vector<8x8xf32> to vector<8x8xbf16>
    %c0_25 = arith.constant 0 : index
    %c0_26 = arith.constant 0 : index
    %c0_27 = arith.constant 0 : index
    %c0_28 = arith.constant 0 : index
    %72 = vector.load %arg8[%c0_25, %c0_26, %c0_27, %c0_28] : memref<1x4x8x8xbf16, #tpu.memory_space<vmem>>, vector<1x1x8x8xbf16>
    %73 = vector.shape_cast %72 : vector<1x1x8x8xbf16> to vector<8x8xbf16>
    %74 = vector.shape_cast %71 : vector<8x8xbf16> to vector<1x1x8x8xbf16>
    tpu.vector_store %arg8[%c0_25, %c0_26, %c0_27, %c0_28], %74 {strides = array<i32>} : memref<1x4x8x8xbf16, #tpu.memory_space<vmem>>, vector<1x1x8x8xbf16>,
    %75 = vector.extract_strided_slice %11 {offsets = [0, 0], sizes = [8, 8], strides = [1, 1]} : vector<8x32xf32> to vector<8x8xf32>
    %76 = arith.truncf %75 : vector<8x8xf32> to vector<8x8xbf16>
    %c0_29 = arith.constant 0 : index
    %c0_30 = arith.constant 0 : index
    %c0_31 = arith.constant 0 : index
    %c0_32 = arith.constant 0 : index
    %77 = vector.load %arg9[%c0_29, %c0_30, %c0_31, %c0_32] : memref<1x4x8x8xbf16, #tpu.memory_space<vmem>>, vector<1x1x8x8xbf16>
    %78 = vector.shape_cast %77 : vector<1x1x8x8xbf16> to vector<8x8xbf16>
    %79 = vector.shape_cast %76 : vector<8x8xbf16> to vector<1x1x8x8xbf16>
    tpu.vector_store %arg9[%c0_29, %c0_30, %c0_31, %c0_32], %79 {strides = array<i32>} : memref<1x4x8x8xbf16, #tpu.memory_space<vmem>>, vector<1x1x8x8xbf16>,
    %80 = vector.extract_strided_slice %38 {offsets = [0, 8], sizes = [8, 8], strides = [1, 1]} : vector<8x32xf32> to vector<8x8xf32>
    %81 = arith.truncf %80 : vector<8x8xf32> to vector<8x8xbf16>
    %c0_33 = arith.constant 0 : index
    %c1 = arith.constant 1 : index
    %c0_34 = arith.constant 0 : index
    %c0_35 = arith.constant 0 : index
    %82 = vector.load %arg7[%c0_33, %c1, %c0_34, %c0_35] : memref<1x4x8x8xbf16, #tpu.memory_space<vmem>>, vector<1x1x8x8xbf16>
    %83 = vector.shape_cast %82 : vector<1x1x8x8xbf16> to vector<8x8xbf16>
    %84 = vector.shape_cast %81 : vector<8x8xbf16> to vector<1x1x8x8xbf16>
    tpu.vector_store %arg7[%c0_33, %c1, %c0_34, %c0_35], %84 {strides = array<i32>} : memref<1x4x8x8xbf16, #tpu.memory_space<vmem>>, vector<1x1x8x8xbf16>,
    %85 = vector.extract_strided_slice %64 {offsets = [8, 0], sizes = [8, 8], strides = [1, 1]} : vector<32x8xf32> to vector<8x8xf32>
    %86 = arith.truncf %85 : vector<8x8xf32> to vector<8x8xbf16>
    %c0_36 = arith.constant 0 : index
    %c1_37 = arith.constant 1 : index
    %c0_38 = arith.constant 0 : index
    %c0_39 = arith.constant 0 : index
    %87 = vector.load %arg8[%c0_36, %c1_37, %c0_38, %c0_39] : memref<1x4x8x8xbf16, #tpu.memory_space<vmem>>, vector<1x1x8x8xbf16>
    %88 = vector.shape_cast %87 : vector<1x1x8x8xbf16> to vector<8x8xbf16>
    %89 = vector.shape_cast %86 : vector<8x8xbf16> to vector<1x1x8x8xbf16>
    tpu.vector_store %arg8[%c0_36, %c1_37, %c0_38, %c0_39], %89 {strides = array<i32>} : memref<1x4x8x8xbf16, #tpu.memory_space<vmem>>, vector<1x1x8x8xbf16>,
    %90 = vector.extract_strided_slice %11 {offsets = [0, 8], sizes = [8, 8], strides = [1, 1]} : vector<8x32xf32> to vector<8x8xf32>
    %91 = arith.truncf %90 : vector<8x8xf32> to vector<8x8xbf16>
    %c0_40 = arith.constant 0 : index
    %c1_41 = arith.constant 1 : index
    %c0_42 = arith.constant 0 : index
    %c0_43 = arith.constant 0 : index
    %92 = vector.load %arg9[%c0_40, %c1_41, %c0_42, %c0_43] : memref<1x4x8x8xbf16, #tpu.memory_space<vmem>>, vector<1x1x8x8xbf16>
    %93 = vector.shape_cast %92 : vector<1x1x8x8xbf16> to vector<8x8xbf16>
    %94 = vector.shape_cast %91 : vector<8x8xbf16> to vector<1x1x8x8xbf16>
    tpu.vector_store %arg9[%c0_40, %c1_41, %c0_42, %c0_43], %94 {strides = array<i32>} : memref<1x4x8x8xbf16, #tpu.memory_space<vmem>>, vector<1x1x8x8xbf16>,
    %95 = vector.extract_strided_slice %38 {offsets = [0, 16], sizes = [8, 8], strides = [1, 1]} : vector<8x32xf32> to vector<8x8xf32>
    %96 = arith.truncf %95 : vector<8x8xf32> to vector<8x8xbf16>
    %c0_44 = arith.constant 0 : index
    %c2 = arith.constant 2 : index
    %c0_45 = arith.constant 0 : index
    %c0_46 = arith.constant 0 : index
    %97 = vector.load %arg7[%c0_44, %c2, %c0_45, %c0_46] : memref<1x4x8x8xbf16, #tpu.memory_space<vmem>>, vector<1x1x8x8xbf16>
    %98 = vector.shape_cast %97 : vector<1x1x8x8xbf16> to vector<8x8xbf16>
    %99 = vector.shape_cast %96 : vector<8x8xbf16> to vector<1x1x8x8xbf16>
    tpu.vector_store %arg7[%c0_44, %c2, %c0_45, %c0_46], %99 {strides = array<i32>} : memref<1x4x8x8xbf16, #tpu.memory_space<vmem>>, vector<1x1x8x8xbf16>,
    %100 = vector.extract_strided_slice %64 {offsets = [16, 0], sizes = [8, 8], strides = [1, 1]} : vector<32x8xf32> to vector<8x8xf32>
    %101 = arith.truncf %100 : vector<8x8xf32> to vector<8x8xbf16>
    %c0_47 = arith.constant 0 : index
    %c2_48 = arith.constant 2 : index
    %c0_49 = arith.constant 0 : index
    %c0_50 = arith.constant 0 : index
    %102 = vector.load %arg8[%c0_47, %c2_48, %c0_49, %c0_50] : memref<1x4x8x8xbf16, #tpu.memory_space<vmem>>, vector<1x1x8x8xbf16>
    %103 = vector.shape_cast %102 : vector<1x1x8x8xbf16> to vector<8x8xbf16>
    %104 = vector.shape_cast %101 : vector<8x8xbf16> to vector<1x1x8x8xbf16>
    tpu.vector_store %arg8[%c0_47, %c2_48, %c0_49, %c0_50], %104 {strides = array<i32>} : memref<1x4x8x8xbf16, #tpu.memory_space<vmem>>, vector<1x1x8x8xbf16>,
    %105 = vector.extract_strided_slice %11 {offsets = [0, 16], sizes = [8, 8], strides = [1, 1]} : vector<8x32xf32> to vector<8x8xf32>
    %106 = arith.truncf %105 : vector<8x8xf32> to vector<8x8xbf16>
    %c0_51 = arith.constant 0 : index
    %c2_52 = arith.constant 2 : index
    %c0_53 = arith.constant 0 : index
    %c0_54 = arith.constant 0 : index
    %107 = vector.load %arg9[%c0_51, %c2_52, %c0_53, %c0_54] : memref<1x4x8x8xbf16, #tpu.memory_space<vmem>>, vector<1x1x8x8xbf16>
    %108 = vector.shape_cast %107 : vector<1x1x8x8xbf16> to vector<8x8xbf16>
    %109 = vector.shape_cast %106 : vector<8x8xbf16> to vector<1x1x8x8xbf16>
    tpu.vector_store %arg9[%c0_51, %c2_52, %c0_53, %c0_54], %109 {strides = array<i32>} : memref<1x4x8x8xbf16, #tpu.memory_space<vmem>>, vector<1x1x8x8xbf16>,
    %110 = vector.extract_strided_slice %38 {offsets = [0, 24], sizes = [8, 8], strides = [1, 1]} : vector<8x32xf32> to vector<8x8xf32>
    %111 = arith.truncf %110 : vector<8x8xf32> to vector<8x8xbf16>
    %c0_55 = arith.constant 0 : index
    %c3 = arith.constant 3 : index
    %c0_56 = arith.constant 0 : index
    %c0_57 = arith.constant 0 : index
    %112 = vector.load %arg7[%c0_55, %c3, %c0_56, %c0_57] : memref<1x4x8x8xbf16, #tpu.memory_space<vmem>>, vector<1x1x8x8xbf16>
    %113 = vector.shape_cast %112 : vector<1x1x8x8xbf16> to vector<8x8xbf16>
    %114 = vector.shape_cast %111 : vector<8x8xbf16> to vector<1x1x8x8xbf16>
    tpu.vector_store %arg7[%c0_55, %c3, %c0_56, %c0_57], %114 {strides = array<i32>} : memref<1x4x8x8xbf16, #tpu.memory_space<vmem>>, vector<1x1x8x8xbf16>,
    %115 = vector.extract_strided_slice %64 {offsets = [24, 0], sizes = [8, 8], strides = [1, 1]} : vector<32x8xf32> to vector<8x8xf32>
    %116 = arith.truncf %115 : vector<8x8xf32> to vector<8x8xbf16>
    %c0_58 = arith.constant 0 : index
    %c3_59 = arith.constant 3 : index
    %c0_60 = arith.constant 0 : index
    %c0_61 = arith.constant 0 : index
    %117 = vector.load %arg8[%c0_58, %c3_59, %c0_60, %c0_61] : memref<1x4x8x8xbf16, #tpu.memory_space<vmem>>, vector<1x1x8x8xbf16>
    %118 = vector.shape_cast %117 : vector<1x1x8x8xbf16> to vector<8x8xbf16>
    %119 = vector.shape_cast %116 : vector<8x8xbf16> to vector<1x1x8x8xbf16>
    tpu.vector_store %arg8[%c0_58, %c3_59, %c0_60, %c0_61], %119 {strides = array<i32>} : memref<1x4x8x8xbf16, #tpu.memory_space<vmem>>, vector<1x1x8x8xbf16>,
    %120 = vector.extract_strided_slice %11 {offsets = [0, 24], sizes = [8, 8], strides = [1, 1]} : vector<8x32xf32> to vector<8x8xf32>
    %121 = arith.truncf %120 : vector<8x8xf32> to vector<8x8xbf16>
    %c0_62 = arith.constant 0 : index
    %c3_63 = arith.constant 3 : index
    %c0_64 = arith.constant 0 : index
    %c0_65 = arith.constant 0 : index
    %122 = vector.load %arg9[%c0_62, %c3_63, %c0_64, %c0_65] : memref<1x4x8x8xbf16, #tpu.memory_space<vmem>>, vector<1x1x8x8xbf16>
    %123 = vector.shape_cast %122 : vector<1x1x8x8xbf16> to vector<8x8xbf16>
    %124 = vector.shape_cast %121 : vector<8x8xbf16> to vector<1x1x8x8xbf16>
    tpu.vector_store %arg9[%c0_62, %c3_63, %c0_64, %c0_65], %124 {strides = array<i32>} : memref<1x4x8x8xbf16, #tpu.memory_space<vmem>>, vector<1x1x8x8xbf16>,
    return
  }
  func.func @transform_0(%arg0: i32, %arg1: i32) -> (i32, i32, i32) {
    %c0_i32 = arith.constant 0 : i32
    %c0_i32_0 = arith.constant 0 : i32
    return %arg0, %arg1, %c0_i32 : i32, i32, i32
  }
  func.func @transform_1(%arg0: i32, %arg1: i32) -> (i32, i32) {
    %c0_i32 = arith.constant 0 : i32
    %c0_i32_0 = arith.constant 0 : i32
    %c0_i32_1 = arith.constant 0 : i32
    return %c0_i32, %c0_i32_0 : i32, i32
  }
  func.func @transform_2(%arg0: i32, %arg1: i32) -> (i32, i32) {
    %c0_i32 = arith.constant 0 : i32
    %c0_i32_0 = arith.constant 0 : i32
    %c0_i32_1 = arith.constant 0 : i32
    return %c0_i32, %c0_i32_0 : i32, i32
  }
  func.func @transform_3(%arg0: i32, %arg1: i32) -> (i32, i32) {
    %c0_i32 = arith.constant 0 : i32
    %c0_i32_0 = arith.constant 0 : i32
    %c0_i32_1 = arith.constant 0 : i32
    return %c0_i32, %c0_i32_0 : i32, i32
  }
  func.func @transform_4(%arg0: i32, %arg1: i32) -> (i32, i32) {
    %c0_i32 = arith.constant 0 : i32
    %c0_i32_0 = arith.constant 0 : i32
    %c0_i32_1 = arith.constant 0 : i32
    return %c0_i32, %c0_i32_0 : i32, i32
  }
  func.func @transform_5(%arg0: i32, %arg1: i32) -> (i32, i32, i32, i32) {
    %c0_i32 = arith.constant 0 : i32
    %c0_i32_0 = arith.constant 0 : i32
    %c0_i32_1 = arith.constant 0 : i32
    return %arg0, %c0_i32, %arg1, %c0_i32_0 : i32, i32, i32, i32
  }
  func.func @transform_6(%arg0: i32, %arg1: i32) -> (i32, i32, i32, i32) {
    %c0_i32 = arith.constant 0 : i32
    %c0_i32_0 = arith.constant 0 : i32
    %c0_i32_1 = arith.constant 0 : i32
    return %arg0, %c0_i32, %c0_i32_0, %arg1 : i32, i32, i32, i32
  }
  func.func @transform_7(%arg0: i32, %arg1: i32) -> (i32, i32, i32, i32) {
    %c0_i32 = arith.constant 0 : i32
    %c0_i32_0 = arith.constant 0 : i32
    %c0_i32_1 = arith.constant 0 : i32
    return %arg0, %c0_i32, %arg1, %c0_i32_0 : i32, i32, i32, i32
  }
}

</mosaic_0001>

<bundles_post_ra>
// kernel: tpu_custom_call.1
= control target key start
LH: loop header
LB: loop body
LE: loop exit
PB: predicated region body
PF: predicated region fallthrough
CT: control target
= control target key end

     0   :  { %s1439_s0 = inlined_call_operand.hbm [shape: bf16[2,8,32], index: 0, kind: input, shape index: {}]   ;;  %s1440_s1 = inlined_call_operand.hbm [shape: bf16[32,96], index: 1, kind: input, shape index: {}]   ;;  %s1441_s2 = inlined_call_operand.vmem [shape: f32[1,96], index: 2, kind: input, shape index: {}]   ;;  %s1442_s3 = inlined_call_operand.vmem [shape: f32[1,32], index: 3, kind: input, shape index: {}]   ;;  %s1443_s4 = inlined_call_operand.vmem [shape: f32[1,32], index: 4, kind: input, shape index: {}]   ;;  %s1444_s5 = inlined_call_operand.hbm [shape: bf16[2,4,8,8], index: 5, kind: output, shape index: {0}]   ;;  %s1445_s6 = inlined_call_operand.hbm [shape: bf16[2,4,8,8], index: 6, kind: output, shape index: {1}]   ;;  %s1446_s7 = inlined_call_operand.hbm [shape: bf16[2,4,8,8], index: 7, kind: output, shape index: {2}]  }
   0x1   :  { %1451 = sst [smem:[#allocation16_spill]] %s1439_s0 }
   0x2   :  { %1452 = sst [smem:[#allocation17_spill]] %s1440_s1 }
   0x3   :  { %1453 = sst [smem:[#allocation18_spill]] %s1441_s2 }
   0x4   :  { %13 = vsyncpa [#allocation3], 0 }
   0x5   :  { %15 = vsyncpa [#allocation3 + $0x1], 0 }
   0x6   :  { %16 = vsyncpa [#allocation6], 0 }
   0x7   :  { %17 = vsyncpa [#allocation4], 0 }
   0x8   :  { %19 = vsyncpa [#allocation4 + $0x1], 0 }
   0x9   :  { %20 = vsyncpa [#allocation9], 0 }
   0xa   :  { %22 = vsyncpa [#allocation9 + $0x1], 0  ;;  %s1189_s24 = smov 0   ;;  %s1191_s25 = smov 0  }
   0xb   :  { %s1193_s26 = smov 0   ;;  %s1195_s27 = smov 0  }
   0xc   :  { %s1197_s28 = smov 0   ;;  %s1199_s29 = smov 0  }
   0xd LB: > { %s1220_s30 = sadd.s32 4294967295, %s1133_s29   ;;  %p776_p0 = scmp.ge.s32.totalorder %s1133_s29, 1  ;;  %s1133_s29 = sphi %s1199_s29, %s28_s29   ;;  %s1129_s28 = sphi %s1197_s28, %s1470_s28   ;;  %s1125_s27 = sphi %s1195_s27, %s1469_s27   ;;  %s1121_s26 = sphi %s1193_s26, %s1468_s26   ;;  %s1117_s25 = sphi %s1191_s25, %s1467_s25   ;;  %s1113_s24 = sphi %s1189_s24, %s1466_s24  }
   0xe   : > { %p63_p1 = scmp.eq.s32.totalorder %s1220_s30, 0  ;;  %p241_p2 = scmp.lt.s32.totalorder %s1133_s29, 3 }
   0xf   : > { %s1454_s1 = sld [smem:[#allocation17_spill]]  ;;  %s1135_s12 = smov [#allocation5]  }
  0x10   : > { %p1228_p3 = pnand %p776_p0, %p241_p2  ;;  %s254_s13 = sshll.u32 %s1135_s12, 4  ;;  %s255_s13 = int_to_ptr.vmem [resolvable:$true] %s254_s13 }
  0x11   : > { %p778_p6 = scmp.ge.s32.totalorder %s1133_s29, 2  ;;  %s1136_s14 = smov 64  }
  0x12   : > { %p833_p4 = pneg %p1228_p3  ;;  %s1137_s15 = smov 4  }
  0x13   : > { %s1447_s16 = sadd.s32 4294967294, %s1133_s29   ;;  %s40_s17 = sadd.s32 1, %s1129_s28 }
  0x14   : > { %p834_p5 = pnand %p833_p4, %p63_p1  ;;  %s49_s18 = sadd.s32 1, %s1121_s26 }
  0x15   : > { %s252_s10 = sshll.u32 %s1454_s1, 4  ;;  %p42_p7 = scmp.ge.s32.totalorder %s40_s17, 2  ;;  %s253_s10 = int_to_ptr.hbm [resolvable:$true] %s252_s10 }
  0x16   : > { %836 = dma.hbm_to_vmem [thread:$0]  (!%p834_p5), %s253_s10, 256, %s255_s13, [#allocation6], %s1136_s14, %s1136_s14, %s1137_s15  }
  0x17   : > { %p56_p8 = scmp.ne.s32.totalorder %s1121_s26, %s1117_s25  ;;  %p57_p9 = scmp.eq.s32.totalorder %s1133_s29, 0 }
  0x18   : > { %p62_p10 = scmp.ne.s32.totalorder %s1117_s25, %s1113_s24  ;;  %s1472_s17 = smov (%p42_p7, %s40_s17), 0 }
  0x19   : > { %1456 = sst [smem:[#allocation15_spill]] %s1472_s17  ;;  %p1247_p11 = por %p57_p9, %p56_p8 }
  0x1a   : > { %p1253_p12 = por %p63_p1, %p62_p10  ;;  %s44_s21 = ssub.s32 %s1129_s28, %s1472_s17 }
  0x1b   : > { %p172_p13 = scmp.eq.s32.totalorder %s1220_s30, 1  ;;  %p47_p0 = scmp.eq.s32.totalorder %s44_s21, 0 }
  0x1c   : > { %p178_p2 = scmp.eq.s32.totalorder %s1447_s16, 1  ;;  %p852_p5 = scmp.lt.s32.totalorder %s1133_s29, 2 }
  0x1d   : > { %p1262_p4 = por %p172_p13, %p56_p8  ;;  %s277_s9 = sand.u32 1, %s1121_s26  }
  0x1e   : > { %s1268_s23 = scalar_select %p47_p0, %s1121_s26, %s49_s18  }
  0x1f   : > { %p1270_p7 = por %p178_p2, %p62_p10  ;;  %s779_s10 = sshll.u32 %s277_s9, 2 }
  0x20   : > { %s780_s12 = sshll.u32 %s1129_s28, 2  ;;  %s1461_s0 = sld [smem:[#allocation16_spill]] }
  0x21   : > { %s281_s21 = scalar_lea.vmem [#allocation2], %s779_s10  ;;  %p838_p8 = pnand %p852_p5, %p1247_p11 }
  0x22   : > { %s290_s16 = sshll.u32 %s281_s21, 4  ;;  %s278_s18 = scalar_lea.sflag [#allocation3], %s277_s9  ;;  %s291_s16 = int_to_ptr.vmem [resolvable:$true] %s290_s16 }
  0x23   : > { %s1284_s17 = sand.u32 (!%p1228_p3), 1, %s1117_s25  }
  0x24   : > { %299 = sbr.rel (%p1228_p3) target bundleno = 1019 (0x3fb), region = 40  ;;  %s782_s13 = sshll.u32 (!%p1228_p3), %s1284_s17, 2 }
  0x25   : > { %s305_s10 = scalar_lea.vmem (!%p1228_p3), [#allocation2], %s782_s13 }
  0x26   : > { %s286_s15 = scalar_lea.hbm %s1461_s0, %s780_s12  ;;  %s302_s12 = scalar_lea.sflag (!%p1228_p3), [#allocation3], %s1284_s17 }
  0x27   : > { %s288_s1 = sshll.u32 %s286_s15, 4  ;;  %s289_s1 = int_to_ptr.hbm [resolvable:$true] %s288_s1 }
  0x28   : > { %840 = dma.hbm_to_vmem [thread:$0]  (!%p838_p8), %s289_s1, 64, %s291_s16, %s278_s18  }
  0x29   : > { %1096 = dma.done.wait (%p1253_p12), %s302_s12, 64  }
  0x2a   : > { %1098 = vsyncadd (%p1253_p12), %s302_s12, 4294967232 }
  0x2b   : > { %1100 = dma.done.wait (%p63_p1), [#allocation6], 256  }
  0x2c   : > { %1102 = vsyncadd (%p63_p1), [#allocation6], 4294967040  ;;  %v817_v0 = vld [vmem:[#allocation5 + $0x8] sm:$0xff]  ;;  %v816_v1 = vld [vmem:[#allocation5] sm:$0xff]  ;;  %vm374_vm0 = vcmask 261120   ;;  %s1462_s2 = sld [smem:[#allocation18_spill]] }
  0x2d   : > { %384 = vmatpush.bf16.msra.mxu0 %v817_v0  ;;  %v353_v2 = vld [vmem:[%s305_s10] sm:$0xf]  ;;  %s1138_s16 = smov 96   ;;  %s1449_s19 = smov 64   ;;  %v1143_v10 = vmov 32.0   ;;  %vm500_vm2 = vcmask 60416  }
  0x2e   : > { %s1140_s20 = smov 56   ;;  %s1141_s9 = smov 48   ;;  %921 = vrcp.f32 %v1143_v10  ;;  %v919_v33 = vld [vmem:[%s1443_s4] ss:$0 sm:$0xff] }
  0x2f   : > { %s1142_s14 = smov 40   ;;  %s1309_s15 = sshll.u32 %s1284_s17, 4  ;;  %v920_v48 = vld [vmem:[%s1442_s3] ss:$0 sm:$0xff] }
  0x30   : > { %s1312_s21 = scalar_lea.vmem [#allocation10], %s1309_s15  ;;  %s1144_s12 = smov 32  }
  0x31   : > { %385 = vmatpush.bf16.msra.mxu0 %v816_v1  ;;  %s1145_s11 = smov 120   ;;  %s1339_s13 = sshll.u32 %s1125_s27, 4 }
  0x32   : > { %v918_v3 = vld [vmem:[%s1462_s2] ss:$0 sm:$0xff]  ;;  %s573_s10 = scalar_lea.hbm %s1444_s5, %s1339_s13  ;;  %s1007_s27 = scalar_lea.hbm %s1444_s5, 32 }
  0x33   : > { %s576_s1 = sshll.u32 %s573_s10, 4  ;;  %s577_s1 = int_to_ptr.hbm [resolvable:$true] %s576_s1 }
  0x34   : > { %795 = vmatmul.msk.bf16.vlgmr.msra.gmra.mxu0 %vm374_vm0, %v353_v2  ;;  %v922_v11 = vpop.eup %921 }
  0x35   : > { %v396_v12 = vmul.f32 32.0, %v922_v11  ;;  %vm400_vm1 = vweird.f32 %v922_v11 }
  0x37   : > { %v397_v13 = vsub.f32 1.0, %v396_v12 }
  0x39   : > { %v398_v14 = vmul.f32 %v922_v11, %v397_v13 }
  0x3b   : > { %v399_v15 = vadd.f32 %v922_v11, %v398_v14 }
  0x3d   : > { %v401_v16 = vsel %vm400_vm1, %v922_v11, %v399_v15 }
  0xb1   : > { %v387_v4 = vpop.f32.mrf.mxu0 }
  0xb2   : > { %v388_v5 = vadd.f32 %v918_v3, %v387_v4 }
  0xb4   : > { %428 = vrot.lane.b32.xlu0 %v388_v5, %s1138_s16  ;;  %v504_v9 = vpack.c.bf16 %v388_v5, %v388_v5  ;;  %v392_v25 = vsel %vm374_vm0, %v388_v5, 0.0 }
  0xb9   : > { %v389_v6 = vpop.f32.mrf.mxu0 }
 0x126   : > { %v429_v7 = vpop.permute.xlu0 %428 }
 0x127   : > { %v431_v8 = vsel %vm374_vm0, %v429_v7, 0.0 }
 0x128   : > { %432 = vadd.xlane.f32.xlu0 %v431_v8 }
 0x13c   : > { %506 = vrot.lane.b32.xlu0 %v504_v9, %s1449_s19 }
 0x144   : > { %519 = vrot.lane.b32.xlu0 %v504_v9, %s1140_s20  ;;  %s337_s20 = scalar_lea.vmem [#allocation7], %s1309_s15 }
 0x145   : > { %s574_s18 = sshll.u32 %s337_s20, 4  ;;  %s575_s18 = int_to_ptr.vmem [resolvable:$true] %s574_s18 }
 0x14c   : > { %532 = vrot.lane.b32.xlu0 %v504_v9, %s1141_s9  ;;  %s1146_s9 = smov 112  }
 0x154   : > { %545 = vrot.lane.b32.xlu0 %v504_v9, %s1142_s14  ;;  %s1147_s14 = smov 104  }
 0x19b   : > { %v433_v17 = vpop.xlane.xlu0 %432 }
 0x19c   : > { %v434_v18 = vmul.f32 %v433_v17, %v401_v16 }
 0x19e   : > { %v1303_v19 = vsub.f32 %v388_v5, %v434_v18 }
 0x1a0   : > { %v436_v20 = vmul.f32 %v1303_v19, %v1303_v19 }
 0x1a2   : > { %438 = vrot.lane.b32.xlu1 %v436_v20, %s1138_s16 }
 0x1ae   : > { %v507_v21 = vpop.permute.xlu0 %506 }
 0x1af   : > { %509 = vst.msk [vmem:[%s1312_s21] sm:$0xf] %vm500_vm2, %v507_v21 }
 0x1b6   : > { %v520_v22 = vpop.permute.xlu0 %519 }
 0x1b7   : > { %798 = vst.msk [vmem:[%s1312_s21 + $0x4] sm:$0xf] %vm500_vm2, %v520_v22 }
 0x1be   : > { %v533_v23 = vpop.permute.xlu0 %532 }
 0x1bf   : > { %801 = vst.msk [vmem:[%s1312_s21 + $0x8] sm:$0xf] %vm500_vm2, %v533_v23 }
 0x1c6   : > { %v546_v24 = vpop.permute.xlu0 %545 }
 0x1c7   : > { %804 = vst.msk [vmem:[%s1312_s21 + $0xc] sm:$0xf] %vm500_vm2, %v546_v24 }
 0x1cc   : > { %393 = vadd.xlane.f32.xlu1 %v392_v25 }
 0x214   : > { %v439_v26 = vpop.permute.xlu1 %438 }
 0x215   : > { %v441_v32 = vsel %vm374_vm0, %v439_v26, 0.0 }
 0x23f   : > { %v394_v27 = vpop.xlane.xlu1 %393 }
 0x240   : > { %v402_v28 = vmul.f32 %v401_v16, %v394_v27 }
 0x242   : > { %v403_v29 = vsub.f32 %v388_v5, %v402_v28 }
 0x244   : > { %v404_v30 = vmul.f32 %v403_v29, %v403_v29 }
 0x246   : > { %v405_v31 = vsel %vm374_vm0, %v404_v30, 0.0 }
 0x247   : > { %406 = vadd.xlane.f32.xlu2 %v405_v31 }
 0x24f   : > { %442 = vadd.xlane.f32.xlu2 %v441_v32 }
 0x267   : > { %459 = vrot.lane.b32.xlu2 %v919_v33, %s1144_s12 }
 0x2ba   : > { %v407_v34 = vpop.xlane.xlu2 %406 }
 0x2bb   : > { %v408_v35 = vmul.f32 %v407_v34, %v401_v16 }
 0x2bd   : > { %v409_v36 = vadd.f32 1e-06, %v408_v35 }
 0x2bf   : > { %923 = vrsqrt.f32 %v409_v36  ;;  %vm416_vm4 = vweird.f32 %v409_v36 }
 0x2c2   : > { %v443_v37 = vpop.xlane.xlu2 %442 }
 0x2c3   : > { %v444_v38 = vmul.f32 %v443_v37, %v401_v16 }
 0x2c5   : > { %v924_v39 = vpop.eup %923  ;;  %v445_v40 = vadd.f32 1e-06, %v444_v38 }
 0x2c6   : > { %v411_v41 = vmul.f32 %v924_v39, %v409_v36  ;;  %vm417_vm3 = vweird.f32 %v924_v39 }
 0x2c7   : > { %925 = vrsqrt.f32 %v445_v40  ;;  %vm418_vm5 = vmor %vm416_vm4, %vm417_vm3  ;;  %vm452_vm7 = vweird.f32 %v445_v40 }
 0x2c8   : > { %v412_v42 = vmul.f32 %v924_v39, %v411_v41 }
 0x2ca   : > { %v413_v43 = vmul.f32 0.5, %v412_v42  ;;  %v460_v59 = vpop.permute.xlu2 %459 }
 0x2cc   : > { %v414_v44 = vsub.f32 1.5, %v413_v43 }
 0x2cd   : > { %v926_v45 = vpop.eup %925 }
 0x2ce   : > { %v415_v46 = vmul.f32 %v924_v39, %v414_v44  ;;  %v447_v47 = vmul.f32 %v926_v45, %v445_v40  ;;  %vm453_vm6 = vweird.f32 %v926_v45 }
 0x2cf   : > { %vm454_vm8 = vmor %vm452_vm7, %vm453_vm6 }
 0x2d0   : > { %v419_v49 = vsel %vm418_vm5, %v924_v39, %v415_v46  ;;  %v448_v50 = vmul.f32 %v926_v45, %v447_v47 }
 0x2d1   : > { %v420_v51 = vmul.f32 %v419_v49, %v403_v29 }
 0x2d2   : > { %v449_v52 = vmul.f32 0.5, %v448_v50 }
 0x2d3   : > { %v424_v53 = vmul.f32 %v920_v48, %v420_v51 }
 0x2d4   : > { %v450_v54 = vsub.f32 1.5, %v449_v52 }
 0x2d5   : > { %v425_v55 = vmul.f32 0.35355338, %v424_v53 }
 0x2d6   : > { %v451_v56 = vmul.f32 %v926_v45, %v450_v54 }
 0x2d7   : > { %v499_v57 = vpack.c.bf16 %v425_v55, %v425_v55 }
 0x2d8   : > { %v455_v58 = vsel %vm454_vm8, %v926_v45, %v451_v56 }
 0x2d9   : > { %511 = vrot.lane.b32.xlu1 %v499_v57, %s1145_s11  ;;  %v456_v60 = vmul.f32 %v455_v58, %v1303_v19  ;;  %501 = vst.msk [vmem:[%s337_s20] sm:$0xf] %vm500_vm2, %v499_v57  ;;  %s551_s11 = scalar_lea.sflag [#allocation4], %s1284_s17 }
 0x2db   : > { %v462_v61 = vmul.f32 %v460_v59, %v456_v60 }
 0x2dd   : > { %464 = vrot.lane.b32.xlu2 %v462_v61, %s1138_s16 }
 0x2e1   : > { %524 = vrot.lane.b32.xlu1 %v499_v57, %s1146_s9  ;;  %s1001_s9 = sshra.s32 %s577_s1, 4  ;;  %s1002_s9 = int_to_ptr.hbm [resolvable:$true] %s1001_s9 }
 0x2e2   : > { %p1008_p10 = scmp.lt.s32.totalorder %s1002_s9, %s1444_s5 }
 0x2e9   : > { %537 = vrot.lane.b32.xlu1 %v499_v57, %s1147_s14  ;;  %s1003_s14 = scalar_lea.hbm %s1002_s9, 16 }
 0x2ea   : > { %p1004_p1 = scmp.ne.s32.totalorder %s1002_s9, %s1003_s14  ;;  %p1009_p11 = scmp.lt.s32.totalorder %s1007_s27, %s1003_s14 }
 0x2ec   : > { %p1005_p3 = pnand %p1004_p1, %p1262_p4  ;;  %p1010_p12 = por %p1009_p11, %p1008_p10 }
 0x2ee   : > { %p1006_p9 = pneg %p1005_p3 }
 0x2f0   : > { %p1011_p13 = pnand %p1010_p12, %p1006_p9 }
 0x337   : > { %v465_v62 = vpop.permute.xlu2 %464 }
 0x338   : > { %467 = vxpose.xlu2.b32.start.end [1/1] (short) (narrow) %v465_v62, 32 }
 0x34b   : > { %v512_v63 = vpop.permute.xlu1 %511 }
 0x34c   : > { %796 = vst.msk [vmem:[%s337_s20 + $0x4] sm:$0xf] %vm500_vm2, %v512_v63 }
 0x353   : > { %v525_v0 = vpop.permute.xlu1 %524 }
 0x354   : > { %799 = vst.msk [vmem:[%s337_s20 + $0x8] sm:$0xf] %vm500_vm2, %v525_v0 }
 0x35b   : > { %v538_v1 = vpop.permute.xlu1 %537 }
 0x35c   : > { %802 = vst.msk [vmem:[%s337_s20 + $0xc] sm:$0xf] %vm500_vm2, %v538_v1 }
 0x35d   : > { %1014 = shalt.err (!%p1011_p13)
}
 0x35e   : > { %s1148_s17 = smov 4   ;;  %s1463_s16 = smov 64  }
 0x35f   : > { %827 = dma.vmem_to_hbm [thread:$0]  (%p1262_p4), %s575_s18, 256, %s577_s1, %s551_s11, %s1463_s16, %s1463_s16, %s1148_s17  }
 0x360   : > { %s344_s0 = scalar_lea.vmem [#allocation8], %s1309_s15  ;;  %s591_s12 = scalar_lea.hbm %s1445_s6, %s1339_s13 }
 0x361   : > { %s609_s1 = scalar_lea.hbm %s1446_s7, %s1339_s13  ;;  %s592_s11 = sshll.u32 %s344_s0, 4  ;;  %s593_s11 = int_to_ptr.vmem [resolvable:$true] %s592_s11 }
 0x362   : > { %s555_s15 = sand.u32 1, %s1220_s30   ;;  %s594_s9 = sshll.u32 %s591_s12, 4  ;;  %s595_s9 = int_to_ptr.hbm [resolvable:$true] %s594_s9 }
 0x363   : > { %s610_s14 = sshll.u32 %s1312_s21, 4  ;;  %s1373_s20 = sshll.u32 %s609_s1, 4  ;;  %s1375_s14 = int_to_ptr.vmem [resolvable:$true] %s610_s14  ;;  %s613_s20 = int_to_ptr.hbm [resolvable:$true] %s1373_s20 }
 0x364   : > { %s1379_s27 = scalar_lea.sflag [#allocation9], %s555_s15  ;;  %s1029_s13 = sshra.s32 %s595_s9, 4  ;;  %s1030_s13 = int_to_ptr.hbm [resolvable:$true] %s1029_s13 }
 0x365   : > { %s1031_s30 = scalar_lea.hbm %s1030_s13, 16  ;;  %s1035_s19 = scalar_lea.hbm %s1445_s6, 32 }
 0x366   : > { %p1032_p0 = scmp.ne.s32.totalorder %s1030_s13, %s1031_s30  ;;  %p1036_p8 = scmp.lt.s32.totalorder %s1030_s13, %s1445_s6 }
 0x367   : > { %p1037_p1 = scmp.lt.s32.totalorder %s1035_s19, %s1031_s30 }
 0x368   : > { %p1033_p2 = pnand %p1032_p0, %p1262_p4 }
 0x369   : > { %p1038_p3 = por %p1037_p1, %p1036_p8 }
 0x36a   : > { %p1034_p5 = pneg %p1033_p2 }
 0x36c   : > { %p1039_p9 = pnand %p1038_p3, %p1034_p5 }
 0x3d1   : > { %v483_v2 = vpop.trf.xlu2 }
 0x3d2   : > { %v502_v3 = vpack.c.bf16 %v483_v2, %v483_v2 }
 0x3d4   : > { %503 = vst.msk [vmem:[%s344_s0] sm:$0xf] %vm500_vm2, %v502_v3 }
 0x3d9   : > { %v484_v4 = vpop.trf.xlu2 }
 0x3da   : > { %v516_v5 = vpack.c.bf16 %v484_v4, %v484_v4 }
 0x3dc   : > { %797 = vst.msk [vmem:[%s344_s0 + $0x4] sm:$0xf] %vm500_vm2, %v516_v5 }
 0x3e1   : > { %v485_v6 = vpop.trf.xlu2 }
 0x3e2   : > { %v529_v7 = vpack.c.bf16 %v485_v6, %v485_v6 }
 0x3e4   : > { %800 = vst.msk [vmem:[%s344_s0 + $0x8] sm:$0xf] %vm500_vm2, %v529_v7 }
 0x3e9   : > { %v486_v8 = vpop.trf.xlu2 }
 0x3ea   : > { %v542_v9 = vpack.c.bf16 %v486_v8, %v486_v8 }
 0x3ec   : > { %803 = vst.msk [vmem:[%s344_s0 + $0xc] sm:$0xf] %vm500_vm2, %v542_v9 }
 0x3ed   : > { %1042 = shalt.err (!%p1039_p9)
}
 0x3ee   : > { %828 = dma.vmem_to_hbm [thread:$0]  (%p1262_p4), %s593_s11, 256, %s595_s9, %s1379_s27, %s1463_s16, %s1463_s16, %s1148_s17  }
 0x3ef   : > { %s1057_s0 = sshra.s32 %s613_s20, 4  ;;  %s1063_s13 = scalar_lea.hbm %s1446_s7, 32  ;;  %s1058_s0 = int_to_ptr.hbm [resolvable:$true] %s1057_s0 }
 0x3f0   : > { %s1059_s18 = scalar_lea.hbm %s1058_s0, 16  ;;  %p1064_p13 = scmp.lt.s32.totalorder %s1058_s0, %s1446_s7 }
 0x3f1   : > { %p1060_p10 = scmp.ne.s32.totalorder %s1058_s0, %s1059_s18  ;;  %p1065_p0 = scmp.lt.s32.totalorder %s1063_s13, %s1059_s18 }
 0x3f3   : > { %p1061_p11 = pnand %p1060_p10, %p1262_p4  ;;  %p1066_p2 = por %p1065_p0, %p1064_p13 }
 0x3f5   : > { %p1062_p12 = pneg %p1061_p11 }
 0x3f7   : > { %p1067_p5 = pnand %p1066_p2, %p1062_p12 }
 0x3f9   : > { %1070 = shalt.err (!%p1067_p5)
}
 0x3fa   : > { %829 = dma.vmem_to_hbm [thread:$0]  (%p1262_p4), %s1375_s14, 256, %s613_s20, %s1379_s27, %s1463_s16, %s1463_s16, %s1148_s17  }
 0x3fb PF: > { %s627_s11 = sand.u32 1, %s1113_s24   ;;  %p842_p8 = pnand %p778_p6, %p1270_p7 }
 0x3fc   : > { %s628_s9 = scalar_lea.sflag [#allocation4], %s627_s11 }
 0x3fd   : > { %p843_p1 = pneg %p842_p8 }
 0x3ff   : > { %1104 = dma.done.wait (%p843_p1), %s628_s9, 256  }
 0x400   : > { %1106 = vsyncadd (%p843_p1), %s628_s9, 4294967040  ;;  %s1464_s22 = sadd.s32 4294967294, %s1133_s29  }
 0x401   : > { %s637_s2 = sand.u32 1, %s1464_s22  }
 0x402   : > { %s638_s19 = scalar_lea.sflag [#allocation9], %s637_s2 }
 0x403   : > { %1108 = dma.done.wait (%p843_p1), %s638_s19, 512  }
 0x404   : > { %1110 = vsyncadd (%p843_p1), %s638_s19, 4294966784  ;;  %s28_s29 = sadd.s32 1, %s1133_s29   ;;  %s1465_s8 = sld [smem:[#allocation15_spill]] }
 0x405   : > { %p25_p4 = scmp.ge.s32.totalorder %s28_s29, 4   ;;  %s1466_s24 = smov %s1117_s25 }
 0x406   : > { %s1467_s25 = smov %s1121_s26  ;;  %s1468_s26 = smov %s1268_s23 }
 0x407   : > { %s1469_s27 = smov %s1129_s28  ;;  %27 = sbr.rel (!%p25_p4) target bundleno = 13 (0xd), region = 130 }
 0x40a   : > { %s1470_s28 = smov %s1465_s8 }
 0x40c   :  { %654 = vsyncpa [#allocation3], 1 }
 0x40d   :  { %656 = vsyncpa [#allocation3 + $0x1], 1 }
 0x40e   :  { %657 = vsyncpa [#allocation6], 1 }
 0x40f   :  { %658 = vsyncpa [#allocation4], 1 }
 0x410   :  { %660 = vsyncpa [#allocation4 + $0x1], 1 }
 0x411   :  { %661 = vsyncpa [#allocation9], 1 }
 0x412   :  { %663 = vsyncpa [#allocation9 + $0x1], 1 }

</bundles_post_ra>
